<compile_context>
chip_gen: v7x
topology: tpu7x:2x2x1
jax: 0.10.0
libtpu: 0.0.40
codegen_flags: <defaults>
</compile_context>

<pallas_src>
import jax
import jax.numpy as jnp
from jax.experimental import pallas as pl
from jax.experimental.pallas import tpu as pltpu

PATCH = 4      # swin patch_size=4
EMBED = 1024   # swin_base num_features == fc2 input dim (nn.Linear(1024, 1))


def swingnet_kernel(patches_ref, w_emb_ref, b_emb_ref, w_fc_ref, b_fc_ref, out_ref):
    # patches_ref: [B, Np, Pd]   w_emb_ref: [Pd, E]   b_emb_ref: [1, E]
    # w_fc_ref:    [1, E] (lane-dense row)   b_fc_ref: [1, 1]   out_ref: [B, 1]

    # Global-average-pool FIRST (linear fold): [B, Np, Pd] -> [B, Pd].
    # XLU sublane reduction over the patch axis; no [B, Np, E] ever exists.
    pooled = jnp.mean(patches_ref[...], axis=1)

    # Frozen-backbone feature extraction stand-in (tiny MXU matmul) + bias,
    # applied once to the already-pooled [B, Pd] vector.
    # TODO(synk): the pretrained Swin window-attention stages of timm
    # 'swin_base_patch4_window12_384' cannot be reproduced in-script; the
    # backbone is stood in by (pooled) patch-embed producing the same 1024-dim
    # feature vector shape that self.model(x) returns.
    feat = jnp.dot(pooled, w_emb_ref[...],
                   preferred_element_type=jnp.float32) + b_emb_ref[...]   # [B, E]

    # nn.Dropout(0.35) is the identity at inference time (forward semantics).

    # fc2: Linear(1024, 1) + sigmoid, as a lane-dense VPU mul + cross-lane reduce
    # instead of an N=1 MXU matmul with a [1024, 1] operand.
    logits = jnp.sum(feat * w_fc_ref[...], axis=-1, keepdims=True) + b_fc_ref[...]
    out_ref[...] = (1.0 / (1.0 + jnp.exp(-logits))).astype(out_ref.dtype)


def swingnet_forward(x, w_emb, b_emb, w_fc, b_fc):
    B, C, H, W = x.shape
    assert H % PATCH == 0 and W % PATCH == 0

    # Glue: extract non-overlapping PATCHxPATCH patches, flattened C*P*P
    # (matches PyTorch Conv2d patch-embed weight flattening order).
    xp = x.reshape(B, C, H // PATCH, PATCH, W // PATCH, PATCH)
    xp = xp.transpose(0, 2, 4, 1, 3, 5)                    # [B, H/P, W/P, C, P, P]
    patches = xp.reshape(B, (H // PATCH) * (W // PATCH), C * PATCH * PATCH)

    vmem_spec = pl.BlockSpec(memory_space=pltpu.MemorySpace.VMEM)
    out = pl.pallas_call(
        swingnet_kernel,
        out_shape=jax.ShapeDtypeStruct((B, 1), jnp.float32),
        in_specs=[vmem_spec] * 5,
        out_specs=vmem_spec,
    )(patches, w_emb, b_emb, w_fc, b_fc)
    return out


def init_params(key, patch_dim, embed_dim):
    k1, k2, k3, k4 = jax.random.split(key, 4)
    w_emb = jax.random.normal(k1, (patch_dim, embed_dim), jnp.float32) * 0.02
    b_emb = jax.random.normal(k2, (1, embed_dim), jnp.float32) * 0.02
    # fc2 = nn.Linear(1024, 1): torch weight [1, 1024] kept as a lane-dense row.
    w_fc = jax.random.normal(k3, (1, embed_dim), jnp.float32) * 0.02
    b_fc = jax.random.normal(k4, (1, 1), jnp.float32) * 0.02
    return w_emb, b_emb, w_fc, b_fc


if __name__ == "__main__":
    key = jax.random.PRNGKey(0)
    k_x, k_p = jax.random.split(key)

    # Small shapes consistent with the module: NCHW image input, 3 channels,
    # spatial divisible by the patch size 4; feature dim kept at 1024 to match
    # nn.Linear(1024, 1).
    B, C, H, W = 2, 3, 48, 48
    x = jax.random.normal(k_x, (B, C, H, W), jnp.float32)

    patch_dim = C * PATCH * PATCH
    w_emb, b_emb, w_fc, b_fc = init_params(k_p, patch_dim, EMBED)

    out = swingnet_forward(x, w_emb, b_emb, w_fc, b_fc)
    out = jax.block_until_ready(out)

    assert out.shape == (B, 1)
    assert bool(jnp.all(jnp.isfinite(out)))
    assert bool(jnp.all((out >= 0.0) & (out <= 1.0)))   # sigmoid range
    print("KERNEL_OK")
</pallas_src>

<mosaic_0001>
module attributes {stable_mosaic.version = 11 : i64} {
  func.func @swingnet_kernel(%arg0: memref<2x144x48xf32, #tpu.memory_space<vmem>>, %arg1: memref<48x1024xf32, #tpu.memory_space<vmem>>, %arg2: memref<1x1024xf32, #tpu.memory_space<vmem>>, %arg3: memref<1x1024xf32, #tpu.memory_space<vmem>>, %arg4: memref<1x1xf32, #tpu.memory_space<vmem>>, %arg5: memref<2x1xf32, #tpu.memory_space<vmem>>) attributes {dimension_semantics = [], scalar_prefetch = 0 : i64, scratch_operands = 0 : i64, tpu.core_type = #tpu.core_type<tc>} {
    %c0 = arith.constant 0 : index
    %c0_0 = arith.constant 0 : index
    %c0_1 = arith.constant 0 : index
    %0 = vector.load %arg0[%c0, %c0_0, %c0_1] : memref<2x144x48xf32, #tpu.memory_space<vmem>>, vector<2x144x48xf32>
    %cst = arith.constant dense<0.000000e+00> : vector<2x48xf32>
    %1 = vector.multi_reduction <add>, %0, %cst [1] : vector<2x144x48xf32> to vector<2x48xf32>
    %cst_2 = arith.constant 1.440000e+02 : f32
    %2 = vector.broadcast %cst_2 : f32 to vector<2x48xf32>
    %3 = arith.divf %1, %2 : vector<2x48xf32>
    %c0_3 = arith.constant 0 : index
    %c0_4 = arith.constant 0 : index
    %4 = vector.load %arg1[%c0_3, %c0_4] : memref<48x1024xf32, #tpu.memory_space<vmem>>, vector<48x1024xf32>
    %cst_5 = arith.constant dense<0.000000e+00> : vector<2x1024xf32>
    %5 = tpu.matmul %3, %4, %cst_5 {dimension_numbers = #tpu.dot_dimension_numbers<[1], [0], [0], [1], [0, 0, 1, 1], [], []>} : vector<2x48xf32>, vector<48x1024xf32>, vector<2x1024xf32> -> vector<2x1024xf32>
    %c0_6 = arith.constant 0 : index
    %c0_7 = arith.constant 0 : index
    %6 = vector.load %arg2[%c0_6, %c0_7] : memref<1x1024xf32, #tpu.memory_space<vmem>>, vector<1x1024xf32>
    %7 = vector.broadcast %6 : vector<1x1024xf32> to vector<2x1024xf32>
    %8 = arith.addf %5, %7 : vector<2x1024xf32>
    %c0_8 = arith.constant 0 : index
    %c0_9 = arith.constant 0 : index
    %9 = vector.load %arg3[%c0_8, %c0_9] : memref<1x1024xf32, #tpu.memory_space<vmem>>, vector<1x1024xf32>
    %10 = vector.broadcast %9 : vector<1x1024xf32> to vector<2x1024xf32>
    %11 = arith.mulf %8, %10 : vector<2x1024xf32>
    %cst_10 = arith.constant dense<0.000000e+00> : vector<2xf32>
    %12 = vector.multi_reduction <add>, %11, %cst_10 [1] : vector<2x1024xf32> to vector<2xf32>
    %13 = vector.shape_cast %12 : vector<2xf32> to vector<2x1xf32>
    %c0_11 = arith.constant 0 : index
    %c0_12 = arith.constant 0 : index
    %14 = vector.load %arg4[%c0_11, %c0_12] : memref<1x1xf32, #tpu.memory_space<vmem>>, vector<1x1xf32>
    %15 = vector.broadcast %14 : vector<1x1xf32> to vector<2x1xf32>
    %16 = arith.addf %13, %15 : vector<2x1xf32>
    %cst_13 = arith.constant 0.000000e+00 : f32
    %17 = vector.broadcast %cst_13 : f32 to vector<2x1xf32>
    %18 = arith.subf %17, %16 : vector<2x1xf32>
    %19 = math.exp %18 : vector<2x1xf32>
    %cst_14 = arith.constant 1.000000e+00 : f32
    %20 = vector.broadcast %cst_14 : f32 to vector<2x1xf32>
    %21 = arith.addf %20, %19 : vector<2x1xf32>
    %cst_15 = arith.constant 1.000000e+00 : f32
    %22 = vector.broadcast %cst_15 : f32 to vector<2x1xf32>
    %23 = arith.divf %22, %21 : vector<2x1xf32>
    %c0_16 = arith.constant 0 : index
    %c0_17 = arith.constant 0 : index
    %24 = vector.load %arg5[%c0_16, %c0_17] : memref<2x1xf32, #tpu.memory_space<vmem>>, vector<2x1xf32>
    tpu.vector_store %arg5[%c0_16, %c0_17], %23 {strides = array<i32>} : memref<2x1xf32, #tpu.memory_space<vmem>>, vector<2x1xf32>,
    return
  }
}

</mosaic_0001>

<bundles_post_ra>
// kernel: tpu_custom_call.1
= control target key start
LH: loop header
LB: loop body
LE: loop exit
PB: predicated region body
PF: predicated region fallthrough
CT: control target
= control target key end

     0   :  { %v670_v3 = vmov 0.0   ;;  %vm58_vm0 = vcmask 392192   ;;  %vm236_vm1 = vcmask 1041409   ;;  %vm574_vm2 = vcmask 1041408   ;;  %s1017_s1 = inlined_call_operand.vmem [shape: f32[48,1024], index: 1, kind: input, shape index: {}]   ;;  %s1018_s0 = inlined_call_operand.vmem [shape: f32[2,144,48], index: 0, kind: input, shape index: {}]   ;;  %s1019_s4 = inlined_call_operand.<no memory space> [shape: f32[1,1], index: 4, kind: input, shape index: {}]   ;;  %s1020_s2 = inlined_call_operand.vmem [shape: f32[1,1024], index: 2, kind: input, shape index: {}]   ;;  %s1021_s3 = inlined_call_operand.vmem [shape: f32[1,1024], index: 3, kind: input, shape index: {}]   ;;  %s1022_s5 = inlined_call_operand.vmem [shape: f32[2,1], index: 5, kind: output, shape index: {}]  }
   0x1   :  { %v145_v0 = vld [vmem:[%s1017_s1 + $0x8] sm:$0xff]  ;;  %v144_v2 = vld [vmem:[%s1017_s1] sm:$0xff]  ;;  %304 = vmatprep.mubr.f32.mxu0 %v670_v3  ;;  %375 = vmatprep.mubr.f32.mxu1 %v670_v3  ;;  %v147_v6 = vld [vmem:[%s1017_s1 + $0x18] sm:$0xff]  ;;  %vm606_vm3 = vcmask 1024  }
   0x2   :  { %v153_v1 = vld [vmem:[%s1017_s1 + $0x48] sm:$0xff]  ;;  %v152_v5 = vld [vmem:[%s1017_s1 + $0x40] sm:$0xff]  ;;  %v155_v7 = vld [vmem:[%s1017_s1 + $0x58] sm:$0xff] }
   0x3   :  { %v617_v4 = vpack.c.bf16 %v153_v1, %v145_v0  ;;  %v619_v8 = vpack.c.bf16 %v152_v5, %v144_v2  ;;  %v629_v9 = vpack.c.bf16 %v155_v7, %v147_v6  ;;  %v161_v10 = vld [vmem:[%s1017_s1 + $0x88] sm:$0xff]  ;;  %v146_v12 = vld [vmem:[%s1017_s1 + $0x10] sm:$0xff]  ;;  %v160_v15 = vld [vmem:[%s1017_s1 + $0x80] sm:$0xff] }
   0x4   :  { %v169_v11 = vld [vmem:[%s1017_s1 + $0xc8] sm:$0xff]  ;;  %v154_v14 = vld [vmem:[%s1017_s1 + $0x50] sm:$0xff]  ;;  %v168_v16 = vld [vmem:[%s1017_s1 + $0xc0] sm:$0xff] }
   0x5   :  { %618 = vmatprep.subr.bf16.mxu0 %v617_v4  ;;  %v621_v13 = vpack.c.bf16 %v169_v11, %v161_v10  ;;  %630 = vmatprep.subr.bf16.mxu1 %v629_v9  ;;  %v631_v17 = vpack.c.bf16 %v154_v14, %v146_v12  ;;  %v623_v18 = vpack.c.bf16 %v168_v16, %v160_v15  ;;  %v163_v19 = vld [vmem:[%s1017_s1 + $0x98] sm:$0xff]  ;;  %v177_v21 = vld [vmem:[%s1017_s1 + $0x108] sm:$0xff]  ;;  %v162_v24 = vld [vmem:[%s1017_s1 + $0x90] sm:$0xff] }
   0x6   :  { %620 = vmatpush1.bf16.msra.mxu0 %v619_v8  ;;  %v171_v20 = vld [vmem:[%s1017_s1 + $0xd8] sm:$0xff]  ;;  %v185_v23 = vld [vmem:[%s1017_s1 + $0x148] sm:$0xff]  ;;  %v170_v25 = vld [vmem:[%s1017_s1 + $0xd0] sm:$0xff] }
   0x7   :  { %622 = vmatprep.subr.bf16.mxu0 %v621_v13  ;;  %v633_v22 = vpack.c.bf16 %v171_v20, %v163_v19  ;;  %632 = vmatpush1.bf16.msra.mxu1 %v631_v17  ;;  %v625_v26 = vpack.c.bf16 %v185_v23, %v177_v21  ;;  %v635_v27 = vpack.c.bf16 %v170_v25, %v162_v24  ;;  %v176_v28 = vld [vmem:[%s1017_s1 + $0x100] sm:$0xff]  ;;  %v179_v30 = vld [vmem:[%s1017_s1 + $0x118] sm:$0xff]  ;;  %v178_v32 = vld [vmem:[%s1017_s1 + $0x110] sm:$0xff] }
   0x8   :  { %v184_v29 = vld [vmem:[%s1017_s1 + $0x140] sm:$0xff]  ;;  %v187_v31 = vld [vmem:[%s1017_s1 + $0x158] sm:$0xff]  ;;  %v186_v33 = vld [vmem:[%s1017_s1 + $0x150] sm:$0xff] }
   0x9   :  { %634 = vmatprep.subr.bf16.mxu1 %v633_v22  ;;  %v627_v34 = vpack.c.bf16 %v184_v29, %v176_v28  ;;  %v637_v35 = vpack.c.bf16 %v187_v31, %v179_v30  ;;  %v149_v36 = vld [vmem:[%s1017_s1 + $0x28] sm:$0xff]  ;;  %v22_v38 = vld [vmem:[%s1018_s0] sm:$0xff]  ;;  %v24_v41 = vld [vmem:[%s1018_s0 + $0x10] sm:$0xff]  ;;  %v639_v44 = vpack.c.bf16 %v186_v33, %v178_v32 }
   0xa   :  { %624 = vmatpush1.bf16.msra.mxu0 %v623_v18  ;;  %v157_v37 = vld [vmem:[%s1017_s1 + $0x68] sm:$0xff]  ;;  %v25_v42 = vld [vmem:[%s1018_s0 + $0x18] sm:$0xff]  ;;  %v59_v43 = vsel %vm58_vm0, %v22_v38, 0.0  ;;  %v62_v46 = vsel %vm58_vm0, %v24_v41, 0.0  ;;  %v26_v47 = vld [vmem:[%s1018_s0 + $0x20] sm:$0xff] }
   0xb   :  { %626 = vmatprep.subr.bf16.mxu0 %v625_v26  ;;  %v641_v39 = vpack.c.bf16 %v157_v37, %v149_v36  ;;  %v23_v40 = vld [vmem:[%s1018_s0 + $0x8] sm:$0xff]  ;;  %636 = vmatpush1.bf16.msra.mxu1 %v635_v27  ;;  %v64_v49 = vsel %vm58_vm0, %v25_v42, 0.0  ;;  %v28_v52 = vld [vmem:[%s1018_s0 + $0x30] sm:$0xff]  ;;  %v66_v54 = vsel %vm58_vm0, %v26_v47, 0.0  ;;  %v41_v55 = vld [vmem:[%s1018_s0 + $0x98] sm:$0xff] }
   0xc   :  { %v60_v45 = vsel %vm58_vm0, %v23_v40, 0.0  ;;  %638 = vmatprep.subr.bf16.mxu1 %v637_v35  ;;  %v27_v50 = vld [vmem:[%s1018_s0 + $0x28] sm:$0xff]  ;;  %v40_v53 = vld [vmem:[%s1018_s0 + $0x90] sm:$0xff]  ;;  %v42_v56 = vld [vmem:[%s1018_s0 + $0xa0] sm:$0xff]  ;;  %v101_v61 = vsel %vm58_vm0, %v41_v55, 0.0  ;;  %v70_v4 = vsel %vm58_vm0, %v28_v52, 0.0 }
   0xd   :  { %v61_v48 = vadd.f32 %v60_v45, %v59_v43  ;;  %v43_v57 = vld [vmem:[%s1018_s0 + $0xa8] sm:$0xff]  ;;  %v100_v59 = vsel %vm58_vm0, %v40_v53, 0.0  ;;  %v68_v60 = vsel %vm58_vm0, %v27_v50, 0.0  ;;  %v103_v62 = vsel %vm58_vm0, %v42_v56, 0.0  ;;  %v29_v63 = vld [vmem:[%s1018_s0 + $0x38] sm:$0xff]  ;;  %v44_v0 = vld [vmem:[%s1018_s0 + $0xb0] sm:$0xff] }
   0xe   :  { %628 = vmatpush1.bf16.msra.mxu0 %v627_v34  ;;  %v102_v2 = vadd.f32 %v101_v61, %v100_v59  ;;  %v105_v5 = vsel %vm58_vm0, %v43_v57, 0.0  ;;  %v30_v6 = vld [vmem:[%s1018_s0 + $0x40] sm:$0xff]  ;;  %v45_v7 = vld [vmem:[%s1018_s0 + $0xb8] sm:$0xff]  ;;  %v72_v10 = vsel %vm58_vm0, %v29_v63, 0.0  ;;  %v107_v11 = vsel %vm58_vm0, %v44_v0, 0.0  ;;  %v31_v12 = vld [vmem:[%s1018_s0 + $0x48] sm:$0xff] }
   0xf   :  { %642 = vmatprep.subr.bf16.mxu0 %v641_v39  ;;  %v63_v51 = vadd.f32 %v62_v46, %v61_v48  ;;  %640 = vmatpush1.bf16.msra.mxu1 %v639_v44  ;;  %v46_v13 = vld [vmem:[%s1018_s0 + $0xc0] sm:$0xff]  ;;  %v151_v16 = vld [vmem:[%s1017_s1 + $0x38] sm:$0xff]  ;;  %v74_v17 = vsel %vm58_vm0, %v30_v6, 0.0  ;;  %v109_v18 = vsel %vm58_vm0, %v45_v7, 0.0  ;;  %v32_v20 = vld [vmem:[%s1018_s0 + $0x50] sm:$0xff]  ;;  %v76_v25 = vsel %vm58_vm0, %v31_v12, 0.0 }
  0x10   :  { %v104_v9 = vadd.f32 %v103_v62, %v102_v2  ;;  %v159_v19 = vld [vmem:[%s1017_s1 + $0x78] sm:$0xff]  ;;  %v47_v21 = vld [vmem:[%s1018_s0 + $0xc8] sm:$0xff]  ;;  %v111_v26 = vsel %vm58_vm0, %v46_v13, 0.0  ;;  %v48_v28 = vld [vmem:[%s1018_s0 + $0xd0] sm:$0xff]  ;;  %v78_v31 = vsel %vm58_vm0, %v32_v20, 0.0 }
  0x11   :  { %v65_v58 = vadd.f32 %v64_v49, %v63_v51  ;;  %v653_v24 = vpack.c.bf16 %v159_v19, %v151_v16  ;;  %v33_v27 = vld [vmem:[%s1018_s0 + $0x58] sm:$0xff]  ;;  %v113_v32 = vsel %vm58_vm0, %v47_v21, 0.0  ;;  %v34_v33 = vld [vmem:[%s1018_s0 + $0x60] sm:$0xff]  ;;  %v115_v38 = vsel %vm58_vm0, %v48_v28, 0.0  ;;  %v35_v39 = vld [vmem:[%s1018_s0 + $0x68] sm:$0xff] }
  0x12   :  { %v106_v15 = vadd.f32 %v105_v5, %v104_v9  ;;  %v49_v34 = vld [vmem:[%s1018_s0 + $0xd8] sm:$0xff]  ;;  %v80_v37 = vsel %vm58_vm0, %v33_v27, 0.0  ;;  %v50_v40 = vld [vmem:[%s1018_s0 + $0xe0] sm:$0xff]  ;;  %v82_v43 = vsel %vm58_vm0, %v34_v33, 0.0  ;;  %v36_v45 = vld [vmem:[%s1018_s0 + $0x70] sm:$0xff]  ;;  %v84_v49 = vsel %vm58_vm0, %v35_v39, 0.0 }
  0x13   :  { %v67_v1 = vadd.f32 %v66_v54, %v65_v58  ;;  %654 = vmatprep.subr.bf16.mxu1 %v653_v24  ;;  %v117_v44 = vsel %vm58_vm0, %v49_v34, 0.0  ;;  %v51_v46 = vld [vmem:[%s1018_s0 + $0xe8] sm:$0xff]  ;;  %v119_v50 = vsel %vm58_vm0, %v50_v40, 0.0  ;;  %v37_v51 = vld [vmem:[%s1018_s0 + $0x78] sm:$0xff]  ;;  %v52_v52 = vld [vmem:[%s1018_s0 + $0xf0] sm:$0xff]  ;;  %v86_v55 = vsel %vm58_vm0, %v36_v45, 0.0 }
  0x14   :  { %v108_v23 = vadd.f32 %v107_v11, %v106_v15  ;;  %v121_v56 = vsel %vm58_vm0, %v51_v46, 0.0  ;;  %v38_v57 = vld [vmem:[%s1018_s0 + $0x80] sm:$0xff]  ;;  %v53_v58 = vld [vmem:[%s1018_s0 + $0xf8] sm:$0xff]  ;;  %v88_v61 = vsel %vm58_vm0, %v37_v51, 0.0  ;;  %v123_v62 = vsel %vm58_vm0, %v52_v52, 0.0  ;;  %v39_v63 = vld [vmem:[%s1018_s0 + $0x88] sm:$0xff] }
  0x15   :  { %v69_v8 = vadd.f32 %v68_v60, %v67_v1  ;;  %v54_v0 = vld [vmem:[%s1018_s0 + $0x100] sm:$0xff]  ;;  %v125_v5 = vsel %vm58_vm0, %v53_v58, 0.0  ;;  %v55_v6 = vld [vmem:[%s1018_s0 + $0x108] sm:$0xff]  ;;  %v92_v9 = vsel %vm58_vm0, %v39_v63, 0.0  ;;  %v56_v11 = vld [vmem:[%s1018_s0 + $0x110] sm:$0xff] }
  0x16   :  { %v110_v30 = vadd.f32 %v109_v18, %v108_v23  ;;  %v57_v15 = vld [vmem:[%s1018_s0 + $0x118] sm:$0xff]  ;;  %v131_v18 = vsel %vm58_vm0, %v56_v11, 0.0  ;;  %v148_v34 = vld [vmem:[%s1017_s1 + $0x20] sm:$0xff]  ;;  %v181_v51 = vld [vmem:[%s1017_s1 + $0x128] sm:$0xff] }
  0x17   :  { %v71_v14 = vadd.f32 %v70_v4, %v69_v8  ;;  %v90_v4 = vsel %vm58_vm0, %v38_v57, 0.0  ;;  %v133_v21 = vsel %vm58_vm0, %v57_v15, 0.0  ;;  %v166_v52 = vld [vmem:[%s1017_s1 + $0xb0] sm:$0xff]  ;;  %v191_v57 = vld [vmem:[%s1017_s1 + $0x178] sm:$0xff] }
  0x18   :  { %v112_v36 = vadd.f32 %v111_v26, %v110_v30 }
  0x19   :  { %v73_v22 = vadd.f32 %v72_v10, %v71_v14  ;;  %v127_v10 = vsel %vm58_vm0, %v54_v0, 0.0  ;;  %v129_v14 = vsel %vm58_vm0, %v55_v6, 0.0  ;;  %v182_v0 = vld [vmem:[%s1017_s1 + $0x130] sm:$0xff]  ;;  %v194_v6 = vlaneseq }
  0x1a   :  { %v114_v42 = vadd.f32 %v113_v32, %v112_v36  ;;  %v165_v36 = vld [vmem:[%s1017_s1 + $0xa8] sm:$0xff] }
  0x1b   :  { %v75_v29 = vadd.f32 %v74_v17, %v73_v22 }
  0x1c   :  { %v116_v48 = vadd.f32 %v115_v38, %v114_v42  ;;  %v158_v38 = vld [vmem:[%s1017_s1 + $0x70] sm:$0xff]  ;;  %v167_v42 = vld [vmem:[%s1017_s1 + $0xb8] sm:$0xff] }
  0x1d   :  { %v77_v35 = vadd.f32 %v76_v25, %v75_v29 }
  0x1e   :  { %v118_v54 = vadd.f32 %v117_v44, %v116_v48  ;;  %v172_v48 = vld [vmem:[%s1017_s1 + $0xe0] sm:$0xff] }
  0x1f   :  { %v79_v41 = vadd.f32 %v78_v31, %v77_v35  ;;  %v156_v35 = vld [vmem:[%s1017_s1 + $0x60] sm:$0xff] }
  0x20   :  { %v120_v60 = vadd.f32 %v119_v50, %v118_v54  ;;  %v643_v45 = vpack.c.bf16 %v156_v35, %v148_v34 }
  0x21   :  { %v81_v47 = vadd.f32 %v80_v37, %v79_v41  ;;  %v150_v37 = vld [vmem:[%s1017_s1 + $0x30] sm:$0xff]  ;;  %v173_v41 = vld [vmem:[%s1017_s1 + $0xe8] sm:$0xff] }
  0x22   :  { %v122_v2 = vadd.f32 %v121_v56, %v120_v60  ;;  %v655_v46 = vpack.c.bf16 %v158_v38, %v150_v37  ;;  %v183_v56 = vld [vmem:[%s1017_s1 + $0x138] sm:$0xff]  ;;  %v180_v60 = vld [vmem:[%s1017_s1 + $0x120] sm:$0xff] }
  0x23   :  { %v83_v53 = vadd.f32 %v82_v43, %v81_v47  ;;  %v175_v43 = vld [vmem:[%s1017_s1 + $0xf8] sm:$0xff]  ;;  %v164_v47 = vld [vmem:[%s1017_s1 + $0xa0] sm:$0xff]  ;;  %v661_v63 = vpack.c.bf16 %v191_v57, %v183_v56 }
  0x24   :  { %v124_v8 = vadd.f32 %v123_v62, %v122_v2  ;;  %v657_v50 = vpack.c.bf16 %v175_v43, %v167_v42  ;;  %v647_v58 = vpack.c.bf16 %v172_v48, %v164_v47  ;;  %v188_v62 = vld [vmem:[%s1017_s1 + $0x160] sm:$0xff] }
  0x25   :  { %v85_v59 = vadd.f32 %v84_v49, %v83_v53  ;;  %v645_v49 = vpack.c.bf16 %v173_v41, %v165_v36  ;;  %v174_v53 = vld [vmem:[%s1017_s1 + $0xf0] sm:$0xff]  ;;  %v651_v2 = vpack.c.bf16 %v188_v62, %v180_v60 }
  0x26   :  { %v126_v13 = vadd.f32 %v125_v5, %v124_v8  ;;  %v10_v5 = vstv %s1019_s4 }
  0x27   :  { %v87_v1 = vadd.f32 %v86_v55, %v85_v59  ;;  %v189_v55 = vld [vmem:[%s1017_s1 + $0x168] sm:$0xff]  ;;  %v659_v59 = vpack.c.bf16 %v174_v53, %v166_v52  ;;  %11 = vst [vmem:[#allocation2] sm:$0x1] %v10_v5 }
  0x28   :  { %v128_v17 = vadd.f32 %v127_v10, %v126_v13 }
  0x29   :  { %v89_v7 = vadd.f32 %v88_v61, %v87_v1  ;;  %v649_v61 = vpack.c.bf16 %v189_v55, %v181_v51  ;;  %v190_v1 = vld [vmem:[%s1017_s1 + $0x170] sm:$0xff] }
  0x2a   :  { %v130_v20 = vadd.f32 %v129_v14, %v128_v17 }
  0x2b   :  { %v91_v12 = vadd.f32 %v90_v4, %v89_v7  ;;  %v663_v4 = vpack.c.bf16 %v190_v1, %v182_v0  ;;  %v195_v7 = vshrl.u32 %v194_v6, 7 }
  0x2c   :  { %v132_v23 = vadd.f32 %v131_v18, %v130_v20 }
  0x2d   :  { %v93_v16 = vadd.f32 %v92_v9, %v91_v12  ;;  %v204_v8 = vsub.s32 2, %v195_v7  ;;  %v192_v9 = vld [vmem:[%s1020_s2] sm:$0xff]  ;;  %v200_v10 = vsub.s32 1, %v195_v7  ;;  %v208_v11 = vsub.s32 3, %v195_v7 }
  0x2e   :  { %v134_v25 = vadd.f32 %v133_v21, %v132_v23  ;;  %v524_v12 = vld [vmem:[%s1021_s3] sm:$0xff]  ;;  %v212_v34 = vsub.s32 4, %v195_v7  ;;  %v220_v35 = vsub.s32 6, %v195_v7  ;;  %v216_v38 = vsub.s32 5, %v195_v7 }
  0x2f   :  { %v94_v19 = vrot.slane %v93_v16, 4  ;;  %v205_v14 = vrot.slane %v192_v9, %v204_v8  ;;  %v201_v15 = vrot.slane %v192_v9, %v200_v10  ;;  %v537_v18 = vrot.slane %v524_v12, %v204_v8  ;;  %v616_v8 = vld [vmem:[#allocation2] ss:$0 sm:$0xff] }
  0x30   :  { %v135_v27 = vrot.slane %v134_v25, 4  ;;  %v533_v20 = vrot.slane %v524_v12, %v200_v10  ;;  %v213_v43 = vrot.slane %v192_v9, %v212_v34  ;;  %v545_v47 = vrot.slane %v524_v12, %v212_v34 }
  0x31   :  { %v95_v22 = vadd.f32 %v94_v19, %v93_v16  ;;  %v209_v16 = vrot.slane %v192_v9, %v208_v11  ;;  %v553_v48 = vrot.slane %v524_v12, %v220_v35  ;;  %v549_v51 = vrot.slane %v524_v12, %v216_v38 }
  0x32   :  { %v136_v29 = vadd.f32 %v135_v27, %v134_v25 }
  0x33   :  { %v96_v24 = vrot.slane %v95_v22, 2 }
  0x34   :  { %v137_v30 = vrot.slane %v136_v29, 2 }
  0x35   :  { %v97_v26 = vadd.f32 %v96_v24, %v95_v22  ;;  %v541_v22 = vrot.slane %v524_v12, %v208_v11 }
  0x36   :  { %v138_v32 = vadd.f32 %v137_v30, %v136_v29 }
  0x37   :  { %v98_v28 = vrot.slane %v97_v26, 1 }
  0x38   :  { %v139_v33 = vrot.slane %v138_v32, 1 }
  0x39   :  { %v99_v31 = vadd.f32 %v98_v28, %v97_v26 }
  0x3a   :  { %v140_v39 = vadd.f32 %v139_v33, %v138_v32 }
  0x3b   :  { %v142_v40 = vmul.f32 0.0069444445, %v99_v31 }
  0x3c   :  { %v143_v44 = vmul.f32 0.0069444445, %v140_v39 }
  0x3e   :  { %v237_v54 = vsel %vm236_vm1, %v143_v44, %v142_v40  ;;  %v224_v40 = vsub.s32 7, %v195_v7  ;;  %v221_v44 = vrot.slane %v192_v9, %v220_v35 }
  0x3f   :  { %612 = vmatmul.mubr.msk.f32.vlgmr.msra.gmra.mrb[0].mxu0 %vm58_vm0, %v237_v54  ;;  %613 = vmatmul.mubr.msk.f32.vlgmr.msra.gmra.mrb[0].mxu1 %vm58_vm0, %v237_v54 }
  0x40   :  { %644 = vmatpush1.bf16.msra.mxu0 %v643_v45  ;;  %656 = vmatpush1.bf16.msra.mxu1 %v655_v46  ;;  %v217_v45 = vrot.slane %v192_v9, %v216_v38 }
  0x41   :  { %646 = vmatprep.subr.bf16.mxu0 %v645_v49  ;;  %658 = vmatprep.subr.bf16.mxu1 %v657_v50  ;;  %v225_v49 = vrot.slane %v192_v9, %v224_v40 }
  0x42   :  { %446 = vmatprep.mubr.f32.mxu0 %v670_v3  ;;  %517 = vmatprep.mubr.f32.mxu1 %v670_v3  ;;  %v196_v3 = vsub.s32 0, %v195_v7 }
  0x44   :  { %648 = vmatpush1.bf16.msra.mxu0 %v647_v58  ;;  %660 = vmatpush1.bf16.msra.mxu1 %v659_v59  ;;  %v197_v13 = vrot.slane %v192_v9, %v196_v3  ;;  %v529_v17 = vrot.slane %v524_v12, %v196_v3 }
  0x45   :  { %650 = vmatprep.subr.bf16.mxu0 %v649_v61  ;;  %662 = vmatprep.subr.bf16.mxu1 %v661_v63  ;;  %v557_v61 = vrot.slane %v524_v12, %v224_v40 }
  0x48   :  { %652 = vmatpush1.bf16.msra.mxu0 %v651_v2  ;;  %664 = vmatpush1.bf16.msra.mxu1 %v663_v4 }
  0x4b   :  { %614 = vmatmul.mubr.msk.f32.vlgmr.msra.gmra.mrb[2].mxu0 %vm58_vm0, %v237_v54  ;;  %615 = vmatmul.mubr.msk.f32.vlgmr.msra.gmra.mrb[2].mxu1 %vm58_vm0, %v237_v54 }
 0x112   :  { %v306_v19 = vpop.f32.mrb[0].mxu0  ;;  %v377_v21 = vpop.f32.mrb[0].mxu1 }
 0x113   :  { %v307_v23 = vadd.f32 %v306_v19, %v197_v13  ;;  %v308_v24 = vpop.f32.mrb[1].mxu0  ;;  %v378_v25 = vadd.f32 %v377_v21, %v205_v14  ;;  %v379_v26 = vpop.f32.mrb[1].mxu1 }
 0x114   :  { %v309_v27 = vadd.f32 %v308_v24, %v201_v15  ;;  %v380_v28 = vadd.f32 %v379_v26, %v209_v16 }
 0x115   :  { %v566_v29 = vmul.f32 %v529_v17, %v307_v23  ;;  %v568_v30 = vmul.f32 %v537_v18, %v378_v25 }
 0x116   :  { %v567_v31 = vmul.f32 %v533_v20, %v309_v27  ;;  %v569_v32 = vmul.f32 %v541_v22, %v380_v28 }
 0x117   :  { %v575_v33 = vsel %vm574_vm2, %v566_v29, 0.0  ;;  %v578_v37 = vsel %vm574_vm2, %v568_v30, 0.0 }
 0x118   :  { %v576_v36 = vsel %vm574_vm2, %v567_v31, 0.0  ;;  %v580_v41 = vsel %vm574_vm2, %v569_v32, 0.0 }
 0x119   :  { %v577_v39 = vadd.f32 %v576_v36, %v575_v33 }
 0x11b   :  { %v579_v42 = vadd.f32 %v578_v37, %v577_v39 }
 0x11d   :  { %v581_v46 = vadd.f32 %v580_v41, %v579_v42 }
 0x11e   :  { %v448_v50 = vpop.f32.mrb[2].mxu0  ;;  %v519_v52 = vpop.f32.mrb[2].mxu1 }
 0x11f   :  { %v449_v53 = vadd.f32 %v448_v50, %v213_v43  ;;  %v450_v54 = vpop.f32.mrb[3].mxu0  ;;  %v520_v55 = vadd.f32 %v519_v52, %v221_v44  ;;  %v521_v56 = vpop.f32.mrb[3].mxu1 }
 0x120   :  { %v451_v57 = vadd.f32 %v450_v54, %v217_v45  ;;  %v522_v60 = vadd.f32 %v521_v56, %v225_v49 }
 0x121   :  { %v570_v58 = vmul.f32 %v545_v47, %v449_v53  ;;  %v572_v59 = vmul.f32 %v553_v48, %v520_v55 }
 0x122   :  { %v571_v62 = vmul.f32 %v549_v51, %v451_v57  ;;  %v573_v2 = vmul.f32 %v557_v61, %v522_v60 }
 0x123   :  { %v582_v63 = vsel %vm574_vm2, %v570_v58, 0.0  ;;  %v586_v4 = vsel %vm574_vm2, %v572_v59, 0.0 }
 0x124   :  { %v583_v0 = vadd.f32 %v582_v63, %v581_v46  ;;  %v584_v1 = vsel %vm574_vm2, %v571_v62, 0.0  ;;  %v588_v7 = vsel %vm574_vm2, %v573_v2, 0.0 }
 0x126   :  { %v585_v5 = vadd.f32 %v584_v1, %v583_v0 }
 0x128   :  { %v587_v6 = vadd.f32 %v586_v4, %v585_v5 }
 0x12a   :  { %v589_v3 = vadd.f32 %v588_v7, %v587_v6 }
 0x12c   :  { %590 = vadd.xlane.f32.xlu0 %v589_v3 }
 0x1b9   :  { %v591_v9 = vpop.xlane.xlu0 %590 }
 0x1ba   :  { %v599_v10 = vadd.f32 %v616_v8, %v591_v9 }
 0x1bc   :  { %v600_v11 = vsub.f32 0.0, %v599_v10 }
 0x1be   :  { %v601_v12 = vmul.f32 1.442695, %v600_v11 }
 0x1c0   :  { %666 = vpow2.f32 %v601_v12 }
 0x1ca   :  { %v667_v13 = vpop.eup %666 }
 0x1cb   :  { %v603_v14 = vadd.f32 1.0, %v667_v13 }
 0x1cd   :  { %668 = vrcp.f32 %v603_v14 }
 0x1d7   :  { %v669_v15 = vpop.eup %668 }
 0x1d8   :  { %607 = vst.msk [vmem:[%s1022_s5] sm:$0x3] %vm606_vm3, %v669_v15 }

</bundles_post_ra>
